<compile_context>
chip_gen: v7x
topology: tpu7x:2x2x1
jax: 0.10.0
libtpu: 0.0.40
codegen_flags: <defaults>
</compile_context>

<pallas_src>
import numpy as np
import jax
import jax.numpy as jnp
from jax.experimental import pallas as pl
from jax.experimental.pallas import tpu as pltpu

EPS = 1e-5  # nn.BatchNorm2d default


# ------------------------------ fused kernel ------------------------------- #

def make_fused_kernel(num_blocks, N, H, W, C):
    NH, WC = N * H, W * C
    K3 = 3 * WC
    inv_cnt = 1.0 / float(N * H * W)          # BN count per channel
    assert (W & (W - 1)) == 0, "lane-group roll tree needs W to be a power of two"

    def kernel(x_ref, r_ref, g_ref, b_ref, fcw_ref, fcb_ref, o_ref, act_ref):
        blk = pl.program_id(0)

        @pl.when(blk == 0)
        def _():
            act_ref[...] = x_ref[...]          # load activation once

        # 0/1 masks zeroing rows whose h-1 / h+1 neighbour is outside the image;
        # this also kills the wrap across the batch boundary introduced by roll.
        row = jax.lax.broadcasted_iota(jnp.int32, (NH, WC), 0)
        hh = jax.lax.rem(row, H)
        mask_m = jnp.where(hh == 0, 0.0, 1.0)
        mask_p = jnp.where(hh == H - 1, 0.0, 1.0)

        def conv3x3(x, widx):
            # h-1 / h+1 neighbours via XLU sublane rolls + VPU mask (no MXU).
            xm = pltpu.roll(x, shift=1, axis=0) * mask_m        # row r <- x[r-1]
            xp = pltpu.roll(x, shift=NH - 1, axis=0) * mask_p   # row r <- x[r+1]
            # One bf16 MXU matmul per conv: (NH, 3*WC) @ (3*WC, WC), f32 acc.
            lhs = jnp.concatenate([xm, x, xp], axis=1).astype(jnp.bfloat16)
            rhs = r_ref[widx * K3:(widx + 1) * K3, :]
            return jnp.dot(lhs, rhs, preferred_element_type=jnp.float32)

        def group_allsum(t):
            # Wrap-around lane-roll tree over the W lane-groups of width C: every
            # lane ends up holding the per-channel sum over all w (broadcast).
            shift = C
            while shift < WC:
                t = t + pltpu.roll(t, shift=shift, axis=1)
                shift *= 2
            return t

        def batchnorm(y, cidx):
            # Training-mode BN (biased batch variance); the sum(y)/sum(y^2)
            # reduction trees are fused; affine folded into one FMA (y*a + c).
            t = group_allsum(jnp.concatenate([y, y * y], axis=0))   # (2*NH, WC)
            s1 = jnp.sum(t[:NH], axis=0, keepdims=True)             # (1, WC)
            s2 = jnp.sum(t[NH:], axis=0, keepdims=True)             # (1, WC)
            mean = s1 * inv_cnt
            var = s2 * inv_cnt - mean * mean
            inv_std = jax.lax.rsqrt(var + EPS)
            a = inv_std * g_ref[cidx:cidx + 1, :]
            c = b_ref[cidx:cidx + 1, :] - mean * a
            return y * a + c

        # One BasicBlock per grid step; activation carried in VMEM scratch.
        x = act_ref[...]                         # (NH, WC) packed NHWC, f32
        identity = x
        y = conv3x3(x, 0)
        y = jnp.maximum(batchnorm(y, 0), 0.0)
        y = conv3x3(y, 1)
        y = batchnorm(y, 1)
        x = jnp.maximum(y + identity, 0.0)       # residual add (no downsample)
        act_ref[...] = x

        @pl.when(blk == num_blocks - 1)
        def _():
            # fc1 fused: fc_w rows were permuted on the host so this reduction
            # equals torch.flatten(NCHW, 1) @ fc1.weight.T + fc1.bias.
            prod = x.reshape(N, H, WC) * fcw_ref[...]               # (N, H, WC)
            t = jnp.sum(prod, axis=1)                               # (N, WC)
            o_ref[...] = jnp.sum(t, axis=1, keepdims=True) + fcb_ref[...]

    return kernel


# ------------------------------ JAX wrapper -------------------------------- #

def resnet_forward(x_nchw, params):
    N, C, H, W = x_nchw.shape
    NH, WC = N * H, W * C
    # NCHW -> NHWC, packed lane-dense as (N*H, W*C); same contiguous NHWC bytes.
    x = jnp.transpose(x_nchw, (0, 2, 3, 1)).reshape(NH, WC)
    num_blocks = params["r_all"].shape[0]
    kernel = make_fused_kernel(num_blocks, N, H, W, C)
    return pl.pallas_call(
        kernel,
        out_shape=jax.ShapeDtypeStruct((N, 1), jnp.float32),
        grid=(num_blocks,),
        in_specs=[
            pl.BlockSpec((NH, WC), lambda b: (0, 0)),                # x (resident)
            pl.BlockSpec((None, 6 * WC, WC), lambda b: (b, 0, 0)),   # conv W / block (bf16)
            pl.BlockSpec((None, 2, WC), lambda b: (b, 0, 0)),        # BN gamma / block
            pl.BlockSpec((None, 2, WC), lambda b: (b, 0, 0)),        # BN beta  / block
            pl.BlockSpec((H, WC), lambda b: (0, 0)),                 # fc weight (resident)
            pl.BlockSpec((1, 1), lambda b: (0, 0)),                  # fc bias
        ],
        out_specs=pl.BlockSpec((N, 1), lambda b: (0, 0)),
        scratch_shapes=[pltpu.VMEM((NH, WC), jnp.float32)],          # activation carry
        compiler_params=pltpu.CompilerParams(
            dimension_semantics=("arbitrary",)),
    )(x, params["r_all"], params["g_all"], params["b_all"],
      params["fc_w"], params["fc_b"])


# ----------------------- host-side parameter folding ----------------------- #

def fold_conv_weight(w_pt, W):
    """torch conv weight (Cout, Cin, 3, 3) -> (3*W*Cin, W*Cout) stacked banded.

    Block dh of the stack satisfies
      R[dh][w_in*Cin+ci, w_out*Cout+co] = w_pt[co, ci, dh, dw], w_in = w_out+dw-1
    (zero outside the band), folding the 3 width taps and the width padding of
    kernel row dh into one lane-dense matmul operand; the three dh blocks line
    up with the in-kernel lane concat [xm | x | xp].
    """
    w = np.transpose(np.asarray(w_pt), (2, 3, 1, 0))  # (kh, kw, Cin, Cout)
    _, _, cin, cout = w.shape
    R = np.zeros((3, W * cin, W * cout), np.float32)
    for dh in range(3):
        for w_out in range(W):
            for dw in range(3):
                w_in = w_out + dw - 1
                if 0 <= w_in < W:
                    R[dh,
                      w_in * cin:(w_in + 1) * cin,
                      w_out * cout:(w_out + 1) * cout] = w[dh, dw]
    return R.reshape(3 * W * cin, W * cout)


def make_params(key, number_of_convolutions, number_of_filters, N, C, H, W):
    assert number_of_filters == C, \
        "BasicBlock has no downsample; residual add needs number_of_filters == 16"
    num_blocks = number_of_convolutions + 1          # basicblock + block_list
    WC = W * C
    keys = jax.random.split(key, 2 * num_blocks + 1)

    r_blocks, g_blocks, b_blocks = [], [], []
    for blk in range(num_blocks):
        r_pair, g_pair, b_pair = [], [], []
        for j in range(2):
            # torch-layout conv weight (Cout, Cin, 3, 3), bias=False
            w_pt = jax.random.normal(keys[2 * blk + j], (C, C, 3, 3), jnp.float32) * 0.1
            r_pair.append(fold_conv_weight(np.asarray(w_pt), W))       # (3*WC, WC)
            g_pair.append(np.tile(np.ones((C,), np.float32), W))       # BN affine defaults
            b_pair.append(np.tile(np.zeros((C,), np.float32), W))
        r_blocks.append(np.concatenate(r_pair, axis=0))                # (6*WC, WC)
        g_blocks.append(np.stack(g_pair, axis=0))                      # (2, WC)
        b_blocks.append(np.stack(b_pair, axis=0))

    r_all = jnp.asarray(np.stack(r_blocks, axis=0)).astype(jnp.bfloat16)  # (nb, 6*WC, WC)
    g_all = jnp.asarray(np.stack(g_blocks, axis=0))                       # (nb, 2, WC) f32
    b_all = jnp.asarray(np.stack(b_blocks, axis=0))

    # fc1: torch weight (1, C*H*W) indexed by c*H*W + h*W + w (flatten of NCHW);
    # permute to the NHWC-packed order [h, w*C + c] used inside the kernel.
    fc_w_pt = jax.random.normal(keys[-1], (C * H * W,), jnp.float32) * 0.02
    fc_w = jnp.transpose(fc_w_pt.reshape(C, H, W), (1, 2, 0)).reshape(H, WC)
    fc_b = jnp.zeros((1, 1), jnp.float32)

    return {"r_all": r_all, "g_all": g_all, "b_all": b_all,
            "fc_w": fc_w, "fc_b": fc_b}


# ----------------------------------- main ----------------------------------- #

if __name__ == "__main__":
    number_of_convolutions = 2
    number_of_filters = 16              # must be 16 (residual add vs 16-ch input)
    N, C, H, W = 2, 16, 8, 8            # fc1 = Linear(16*8*8, 1) fixes C, H, W

    key = jax.random.PRNGKey(0)
    kx, kp = jax.random.split(key)

    x = jax.random.normal(kx, (N, C, H, W), jnp.float32)   # NCHW, like PyTorch
    params = make_params(kp, number_of_convolutions, number_of_filters, N, C, H, W)

    out = jax.jit(resnet_forward)(x, params)
    out = jax.block_until_ready(out)
    assert out.shape == (N, 1), out.shape
    print("KERNEL_OK")
</pallas_src>

<mosaic_0001>
module attributes {stable_mosaic.version = 11 : i64} {
  func.func @kernel(%arg0: i32, %arg1: memref<16x128xf32, #tpu.memory_space<vmem>>, %arg2: memref<1x768x128xbf16, #tpu.memory_space<vmem>>, %arg3: memref<1x2x128xf32, #tpu.memory_space<vmem>>, %arg4: memref<1x2x128xf32, #tpu.memory_space<vmem>>, %arg5: memref<8x128xf32, #tpu.memory_space<vmem>>, %arg6: memref<1x1xf32, #tpu.memory_space<vmem>>, %arg7: memref<2x1xf32, #tpu.memory_space<vmem>>, %arg8: memref<16x128xf32, #tpu.memory_space<vmem>>) attributes {dimension_semantics = [#tpu.dimension_semantics<arbitrary>], iteration_bounds = array<i64: 3>, scalar_prefetch = 0 : i64, scratch_operands = 1 : i64, tpu.core_type = #tpu.core_type<tc>, window_params = [{pipeline_mode = #tpu.pipeline_mode<synchronous>, transform_indices = @transform_0, window_bounds = array<i64: 16, 128>}, {transform_indices = @transform_1, window_bounds = array<i64: 1, 768, 128>}, {transform_indices = @transform_2, window_bounds = array<i64: 1, 2, 128>}, {transform_indices = @transform_3, window_bounds = array<i64: 1, 2, 128>}, {pipeline_mode = #tpu.pipeline_mode<synchronous>, transform_indices = @transform_4, window_bounds = array<i64: 8, 128>}, {pipeline_mode = #tpu.pipeline_mode<synchronous>, transform_indices = @transform_5, window_bounds = array<i64: 1, 1>}, {pipeline_mode = #tpu.pipeline_mode<synchronous>, transform_indices = @transform_6, window_bounds = array<i64: 2, 1>}]} {
    %c0_i32 = arith.constant 0 : i32
    %0 = arith.cmpi eq, %arg0, %c0_i32 : i32
    %1 = arith.extui %0 : i1 to i32
    %c0_i32_0 = arith.constant 0 : i32
    %2 = arith.cmpi ne, %1, %c0_i32_0 : i32
    scf.if %2 {
      %c0_44 = arith.constant 0 : index
      %c0_45 = arith.constant 0 : index
      %112 = vector.load %arg1[%c0_44, %c0_45] : memref<16x128xf32, #tpu.memory_space<vmem>>, vector<16x128xf32>
      %c0_46 = arith.constant 0 : index
      %c0_47 = arith.constant 0 : index
      %113 = vector.load %arg8[%c0_46, %c0_47] : memref<16x128xf32, #tpu.memory_space<vmem>>, vector<16x128xf32>
      tpu.vector_store %arg8[%c0_46, %c0_47], %112 {strides = array<i32>} : memref<16x128xf32, #tpu.memory_space<vmem>>, vector<16x128xf32>,
    } else {
    }
    %3 = tpu.iota {dimensions = array<i32: 0>} : vector<16x128xi32>
    %c8_i32 = arith.constant 8 : i32
    %4 = vector.broadcast %c8_i32 : i32 to vector<16x128xi32>
    %5 = arith.remsi %3, %4 : vector<16x128xi32>
    %c0_i32_1 = arith.constant 0 : i32
    %6 = vector.broadcast %c0_i32_1 : i32 to vector<16x128xi32>
    %7 = arith.cmpi eq, %5, %6 : vector<16x128xi32>
    %cst = arith.constant 0.000000e+00 : f32
    %cst_2 = arith.constant 1.000000e+00 : f32
    %8 = vector.broadcast %cst : f32 to vector<16x128xf32>
    %9 = vector.broadcast %cst_2 : f32 to vector<16x128xf32>
    %10 = arith.select %7, %8, %9 : vector<16x128xi1>, vector<16x128xf32>
    %c7_i32 = arith.constant 7 : i32
    %11 = vector.broadcast %c7_i32 : i32 to vector<16x128xi32>
    %12 = arith.cmpi eq, %5, %11 : vector<16x128xi32>
    %cst_3 = arith.constant 0.000000e+00 : f32
    %cst_4 = arith.constant 1.000000e+00 : f32
    %13 = vector.broadcast %cst_3 : f32 to vector<16x128xf32>
    %14 = vector.broadcast %cst_4 : f32 to vector<16x128xf32>
    %15 = arith.select %12, %13, %14 : vector<16x128xi1>, vector<16x128xf32>
    %c0 = arith.constant 0 : index
    %c0_5 = arith.constant 0 : index
    %16 = vector.load %arg8[%c0, %c0_5] : memref<16x128xf32, #tpu.memory_space<vmem>>, vector<16x128xf32>
    %c1_i32 = arith.constant 1 : i32
    %17 = tpu.dynamic_rotate %16 by %c1_i32 dim 0 : vector<16x128xf32>, i32 -> vector<16x128xf32>
    %18 = arith.mulf %17, %10 : vector<16x128xf32>
    %c15_i32 = arith.constant 15 : i32
    %19 = tpu.dynamic_rotate %16 by %c15_i32 dim 0 : vector<16x128xf32>, i32 -> vector<16x128xf32>
    %20 = arith.mulf %19, %15 : vector<16x128xf32>
    %21 = tpu.concatenate %18, %16, %20 in 1 : vector<16x128xf32>, vector<16x128xf32>, vector<16x128xf32> -> vector<16x384xf32>
    %22 = arith.truncf %21 : vector<16x384xf32> to vector<16x384xbf16>
    %c0_6 = arith.constant 0 : index
    %c0_7 = arith.constant 0 : index
    %c0_8 = arith.constant 0 : index
    %23 = vector.load %arg2[%c0_6, %c0_7, %c0_8] : memref<1x768x128xbf16, #tpu.memory_space<vmem>>, vector<1x384x128xbf16>
    %24 = vector.shape_cast %23 : vector<1x384x128xbf16> to vector<384x128xbf16>
    %cst_9 = arith.constant dense<0.000000e+00> : vector<16x128xf32>
    %25 = tpu.matmul %22, %24, %cst_9 {dimension_numbers = #tpu.dot_dimension_numbers<[1], [0], [0], [1], [0, 0, 1, 1], [], []>} : vector<16x384xbf16>, vector<384x128xbf16>, vector<16x128xf32> -> vector<16x128xf32>
    %26 = arith.mulf %25, %25 : vector<16x128xf32>
    %27 = tpu.concatenate %25, %26 in 0 : vector<16x128xf32>, vector<16x128xf32> -> vector<32x128xf32>
    %c16_i32 = arith.constant 16 : i32
    %28 = tpu.dynamic_rotate %27 by %c16_i32 dim 1 : vector<32x128xf32>, i32 -> vector<32x128xf32>
    %29 = arith.addf %27, %28 : vector<32x128xf32>
    %c32_i32 = arith.constant 32 : i32
    %30 = tpu.dynamic_rotate %29 by %c32_i32 dim 1 : vector<32x128xf32>, i32 -> vector<32x128xf32>
    %31 = arith.addf %29, %30 : vector<32x128xf32>
    %c64_i32 = arith.constant 64 : i32
    %32 = tpu.dynamic_rotate %31 by %c64_i32 dim 1 : vector<32x128xf32>, i32 -> vector<32x128xf32>
    %33 = arith.addf %31, %32 : vector<32x128xf32>
    %34 = vector.extract_strided_slice %33 {offsets = [0, 0], sizes = [16, 128], strides = [1, 1]} : vector<32x128xf32> to vector<16x128xf32>
    %cst_10 = arith.constant dense<0.000000e+00> : vector<128xf32>
    %35 = vector.multi_reduction <add>, %34, %cst_10 [0] : vector<16x128xf32> to vector<128xf32>
    %36 = vector.shape_cast %35 : vector<128xf32> to vector<1x128xf32>
    %37 = vector.extract_strided_slice %33 {offsets = [16, 0], sizes = [16, 128], strides = [1, 1]} : vector<32x128xf32> to vector<16x128xf32>
    %cst_11 = arith.constant dense<0.000000e+00> : vector<128xf32>
    %38 = vector.multi_reduction <add>, %37, %cst_11 [0] : vector<16x128xf32> to vector<128xf32>
    %39 = vector.shape_cast %38 : vector<128xf32> to vector<1x128xf32>
    %cst_12 = arith.constant 7.812500e-03 : f32
    %40 = vector.broadcast %cst_12 : f32 to vector<1x128xf32>
    %41 = arith.mulf %36, %40 : vector<1x128xf32>
    %cst_13 = arith.constant 7.812500e-03 : f32
    %42 = vector.broadcast %cst_13 : f32 to vector<1x128xf32>
    %43 = arith.mulf %39, %42 : vector<1x128xf32>
    %44 = arith.mulf %41, %41 : vector<1x128xf32>
    %45 = arith.subf %43, %44 : vector<1x128xf32>
    %cst_14 = arith.constant 9.99999974E-6 : f32
    %46 = vector.broadcast %cst_14 : f32 to vector<1x128xf32>
    %47 = arith.addf %45, %46 : vector<1x128xf32>
    %48 = math.rsqrt %47 : vector<1x128xf32>
    %c0_15 = arith.constant 0 : index
    %c0_16 = arith.constant 0 : index
    %c0_17 = arith.constant 0 : index
    %49 = vector.load %arg3[%c0_15, %c0_16, %c0_17] : memref<1x2x128xf32, #tpu.memory_space<vmem>>, vector<1x1x128xf32>
    %50 = vector.shape_cast %49 : vector<1x1x128xf32> to vector<1x128xf32>
    %51 = arith.mulf %48, %50 : vector<1x128xf32>
    %c0_18 = arith.constant 0 : index
    %c0_19 = arith.constant 0 : index
    %c0_20 = arith.constant 0 : index
    %52 = vector.load %arg4[%c0_18, %c0_19, %c0_20] : memref<1x2x128xf32, #tpu.memory_space<vmem>>, vector<1x1x128xf32>
    %53 = vector.shape_cast %52 : vector<1x1x128xf32> to vector<1x128xf32>
    %54 = arith.mulf %41, %51 : vector<1x128xf32>
    %55 = arith.subf %53, %54 : vector<1x128xf32>
    %56 = vector.broadcast %51 : vector<1x128xf32> to vector<16x128xf32>
    %57 = arith.mulf %25, %56 : vector<16x128xf32>
    %58 = vector.broadcast %55 : vector<1x128xf32> to vector<16x128xf32>
    %59 = arith.addf %57, %58 : vector<16x128xf32>
    %cst_21 = arith.constant 0.000000e+00 : f32
    %60 = vector.broadcast %cst_21 : f32 to vector<16x128xf32>
    %61 = arith.maximumf %59, %60 : vector<16x128xf32>
    %c1_i32_22 = arith.constant 1 : i32
    %62 = tpu.dynamic_rotate %61 by %c1_i32_22 dim 0 : vector<16x128xf32>, i32 -> vector<16x128xf32>
    %63 = arith.mulf %62, %10 : vector<16x128xf32>
    %c15_i32_23 = arith.constant 15 : i32
    %64 = tpu.dynamic_rotate %61 by %c15_i32_23 dim 0 : vector<16x128xf32>, i32 -> vector<16x128xf32>
    %65 = arith.mulf %64, %15 : vector<16x128xf32>
    %66 = tpu.concatenate %63, %61, %65 in 1 : vector<16x128xf32>, vector<16x128xf32>, vector<16x128xf32> -> vector<16x384xf32>
    %67 = arith.truncf %66 : vector<16x384xf32> to vector<16x384xbf16>
    %c0_24 = arith.constant 0 : index
    %c384 = arith.constant 384 : index
    %c0_25 = arith.constant 0 : index
    %68 = vector.load %arg2[%c0_24, %c384, %c0_25] : memref<1x768x128xbf16, #tpu.memory_space<vmem>>, vector<1x384x128xbf16>
    %69 = vector.shape_cast %68 : vector<1x384x128xbf16> to vector<384x128xbf16>
    %cst_26 = arith.constant dense<0.000000e+00> : vector<16x128xf32>
    %70 = tpu.matmul %67, %69, %cst_26 {dimension_numbers = #tpu.dot_dimension_numbers<[1], [0], [0], [1], [0, 0, 1, 1], [], []>} : vector<16x384xbf16>, vector<384x128xbf16>, vector<16x128xf32> -> vector<16x128xf32>
    %71 = arith.mulf %70, %70 : vector<16x128xf32>
    %72 = tpu.concatenate %70, %71 in 0 : vector<16x128xf32>, vector<16x128xf32> -> vector<32x128xf32>
    %c16_i32_27 = arith.constant 16 : i32
    %73 = tpu.dynamic_rotate %72 by %c16_i32_27 dim 1 : vector<32x128xf32>, i32 -> vector<32x128xf32>
    %74 = arith.addf %72, %73 : vector<32x128xf32>
    %c32_i32_28 = arith.constant 32 : i32
    %75 = tpu.dynamic_rotate %74 by %c32_i32_28 dim 1 : vector<32x128xf32>, i32 -> vector<32x128xf32>
    %76 = arith.addf %74, %75 : vector<32x128xf32>
    %c64_i32_29 = arith.constant 64 : i32
    %77 = tpu.dynamic_rotate %76 by %c64_i32_29 dim 1 : vector<32x128xf32>, i32 -> vector<32x128xf32>
    %78 = arith.addf %76, %77 : vector<32x128xf32>
    %79 = vector.extract_strided_slice %78 {offsets = [0, 0], sizes = [16, 128], strides = [1, 1]} : vector<32x128xf32> to vector<16x128xf32>
    %cst_30 = arith.constant dense<0.000000e+00> : vector<128xf32>
    %80 = vector.multi_reduction <add>, %79, %cst_30 [0] : vector<16x128xf32> to vector<128xf32>
    %81 = vector.shape_cast %80 : vector<128xf32> to vector<1x128xf32>
    %82 = vector.extract_strided_slice %78 {offsets = [16, 0], sizes = [16, 128], strides = [1, 1]} : vector<32x128xf32> to vector<16x128xf32>
    %cst_31 = arith.constant dense<0.000000e+00> : vector<128xf32>
    %83 = vector.multi_reduction <add>, %82, %cst_31 [0] : vector<16x128xf32> to vector<128xf32>
    %84 = vector.shape_cast %83 : vector<128xf32> to vector<1x128xf32>
    %cst_32 = arith.constant 7.812500e-03 : f32
    %85 = vector.broadcast %cst_32 : f32 to vector<1x128xf32>
    %86 = arith.mulf %81, %85 : vector<1x128xf32>
    %cst_33 = arith.constant 7.812500e-03 : f32
    %87 = vector.broadcast %cst_33 : f32 to vector<1x128xf32>
    %88 = arith.mulf %84, %87 : vector<1x128xf32>
    %89 = arith.mulf %86, %86 : vector<1x128xf32>
    %90 = arith.subf %88, %89 : vector<1x128xf32>
    %cst_34 = arith.constant 9.99999974E-6 : f32
    %91 = vector.broadcast %cst_34 : f32 to vector<1x128xf32>
    %92 = arith.addf %90, %91 : vector<1x128xf32>
    %93 = math.rsqrt %92 : vector<1x128xf32>
    %c0_35 = arith.constant 0 : index
    %c1 = arith.constant 1 : index
    %c0_36 = arith.constant 0 : index
    %94 = vector.load %arg3[%c0_35, %c1, %c0_36] : memref<1x2x128xf32, #tpu.memory_space<vmem>>, vector<1x1x128xf32>
    %95 = vector.shape_cast %94 : vector<1x1x128xf32> to vector<1x128xf32>
    %96 = arith.mulf %93, %95 : vector<1x128xf32>
    %c0_37 = arith.constant 0 : index
    %c1_38 = arith.constant 1 : index
    %c0_39 = arith.constant 0 : index
    %97 = vector.load %arg4[%c0_37, %c1_38, %c0_39] : memref<1x2x128xf32, #tpu.memory_space<vmem>>, vector<1x1x128xf32>
    %98 = vector.shape_cast %97 : vector<1x1x128xf32> to vector<1x128xf32>
    %99 = arith.mulf %86, %96 : vector<1x128xf32>
    %100 = arith.subf %98, %99 : vector<1x128xf32>
    %101 = vector.broadcast %96 : vector<1x128xf32> to vector<16x128xf32>
    %102 = arith.mulf %70, %101 : vector<16x128xf32>
    %103 = vector.broadcast %100 : vector<1x128xf32> to vector<16x128xf32>
    %104 = arith.addf %102, %103 : vector<16x128xf32>
    %105 = arith.addf %104, %16 : vector<16x128xf32>
    %cst_40 = arith.constant 0.000000e+00 : f32
    %106 = vector.broadcast %cst_40 : f32 to vector<16x128xf32>
    %107 = arith.maximumf %105, %106 : vector<16x128xf32>
    %c0_41 = arith.constant 0 : index
    %c0_42 = arith.constant 0 : index
    %108 = vector.load %arg8[%c0_41, %c0_42] : memref<16x128xf32, #tpu.memory_space<vmem>>, vector<16x128xf32>
    tpu.vector_store %arg8[%c0_41, %c0_42], %107 {strides = array<i32>} : memref<16x128xf32, #tpu.memory_space<vmem>>, vector<16x128xf32>,
    %c2_i32 = arith.constant 2 : i32
    %109 = arith.cmpi eq, %arg0, %c2_i32 : i32
    %110 = arith.extui %109 : i1 to i32
    %c0_i32_43 = arith.constant 0 : i32
    %111 = arith.cmpi ne, %110, %c0_i32_43 : i32
    scf.if %111 {
      %112 = vector.shape_cast %107 : vector<16x128xf32> to vector<2x8x128xf32>
      %c0_44 = arith.constant 0 : index
      %c0_45 = arith.constant 0 : index
      %113 = vector.load %arg5[%c0_44, %c0_45] : memref<8x128xf32, #tpu.memory_space<vmem>>, vector<8x128xf32>
      %114 = vector.shape_cast %113 : vector<8x128xf32> to vector<1x8x128xf32>
      %115 = vector.broadcast %114 : vector<1x8x128xf32> to vector<2x8x128xf32>
      %116 = arith.mulf %112, %115 : vector<2x8x128xf32>
      %cst_46 = arith.constant dense<0.000000e+00> : vector<2x128xf32>
      %117 = vector.multi_reduction <add>, %116, %cst_46 [1] : vector<2x8x128xf32> to vector<2x128xf32>
      %cst_47 = arith.constant dense<0.000000e+00> : vector<2xf32>
      %118 = vector.multi_reduction <add>, %117, %cst_47 [1] : vector<2x128xf32> to vector<2xf32>
      %119 = vector.shape_cast %118 : vector<2xf32> to vector<2x1xf32>
      %c0_48 = arith.constant 0 : index
      %c0_49 = arith.constant 0 : index
      %120 = vector.load %arg6[%c0_48, %c0_49] : memref<1x1xf32, #tpu.memory_space<vmem>>, vector<1x1xf32>
      %121 = vector.broadcast %120 : vector<1x1xf32> to vector<2x1xf32>
      %122 = arith.addf %119, %121 : vector<2x1xf32>
      %c0_50 = arith.constant 0 : index
      %c0_51 = arith.constant 0 : index
      %123 = vector.load %arg7[%c0_50, %c0_51] : memref<2x1xf32, #tpu.memory_space<vmem>>, vector<2x1xf32>
      tpu.vector_store %arg7[%c0_50, %c0_51], %122 {strides = array<i32>} : memref<2x1xf32, #tpu.memory_space<vmem>>, vector<2x1xf32>,
    } else {
    }
    return
  }
  func.func @transform_0(%arg0: i32) -> (i32, i32) {
    %c0_i32 = arith.constant 0 : i32
    %c0_i32_0 = arith.constant 0 : i32
    %c0_i32_1 = arith.constant 0 : i32
    return %c0_i32, %c0_i32_0 : i32, i32
  }
  func.func @transform_1(%arg0: i32) -> (i32, i32, i32) {
    %c0_i32 = arith.constant 0 : i32
    %c0_i32_0 = arith.constant 0 : i32
    %c0_i32_1 = arith.constant 0 : i32
    return %arg0, %c0_i32, %c0_i32_0 : i32, i32, i32
  }
  func.func @transform_2(%arg0: i32) -> (i32, i32, i32) {
    %c0_i32 = arith.constant 0 : i32
    %c0_i32_0 = arith.constant 0 : i32
    %c0_i32_1 = arith.constant 0 : i32
    return %arg0, %c0_i32, %c0_i32_0 : i32, i32, i32
  }
  func.func @transform_3(%arg0: i32) -> (i32, i32, i32) {
    %c0_i32 = arith.constant 0 : i32
    %c0_i32_0 = arith.constant 0 : i32
    %c0_i32_1 = arith.constant 0 : i32
    return %arg0, %c0_i32, %c0_i32_0 : i32, i32, i32
  }
  func.func @transform_4(%arg0: i32) -> (i32, i32) {
    %c0_i32 = arith.constant 0 : i32
    %c0_i32_0 = arith.constant 0 : i32
    %c0_i32_1 = arith.constant 0 : i32
    return %c0_i32, %c0_i32_0 : i32, i32
  }
  func.func @transform_5(%arg0: i32) -> (i32, i32) {
    %c0_i32 = arith.constant 0 : i32
    %c0_i32_0 = arith.constant 0 : i32
    %c0_i32_1 = arith.constant 0 : i32
    return %c0_i32, %c0_i32_0 : i32, i32
  }
  func.func @transform_6(%arg0: i32) -> (i32, i32) {
    %c0_i32 = arith.constant 0 : i32
    %c0_i32_0 = arith.constant 0 : i32
    %c0_i32_1 = arith.constant 0 : i32
    return %c0_i32, %c0_i32_0 : i32, i32
  }
}

</mosaic_0001>

<bundles_post_ra>
// kernel: resnet_forward.1
= control target key start
LH: loop header
LB: loop body
LE: loop exit
PB: predicated region body
PF: predicated region fallthrough
CT: control target
= control target key end

     0   :  { %s1873_s0 = inlined_call_operand.vmem [shape: f32[16,128], index: 0, kind: input, shape index: {}]   ;;  %s1874_s1 = inlined_call_operand.hbm [shape: bf16[3,768,128], index: 1, kind: input, shape index: {}]   ;;  %s1875_s2 = inlined_call_operand.vmem [shape: f32[3,2,128], index: 2, kind: input, shape index: {}]   ;;  %s1876_s3 = inlined_call_operand.vmem [shape: f32[3,2,128], index: 3, kind: input, shape index: {}]   ;;  %s1877_s4 = inlined_call_operand.vmem [shape: f32[8,128], index: 4, kind: input, shape index: {}]   ;;  %s1878_s5 = inlined_call_operand.<no memory space> [shape: f32[1,1], index: 5, kind: input, shape index: {}]   ;;  %s1879_s6 = inlined_call_operand.vmem [shape: f32[2,1], index: 6, kind: output, shape index: {}]  }
   0x1   :  { %v11_v0 = vstv %s1878_s5 }
   0x2   :  { %12 = vst [vmem:[#allocation3] sm:$0x1] %v11_v0 }
   0x3   :  { %13 = vsyncpa [#allocation5], 0 }
   0x4   :  { %15 = vsyncpa [#allocation5 + $0x1], 0  ;;  %s1545_s23 = smov 0   ;;  %s1547_s24 = smov 0  }
   0x5   :  { %s1549_s25 = smov 0   ;;  %s1551_s26 = smov 0  }
   0x6 LB: > { %s1564_s5 = sadd.s32 4294967295, %s1496_s26   ;;  %s1567_s27 = sadd.s32 1, %s1496_s26   ;;  %s1496_s26 = sphi %s1551_s26, %s1886_s26   ;;  %s1492_s25 = sphi %s1549_s25, %s1885_s25   ;;  %s1488_s24 = sphi %s1547_s24, %s1884_s24   ;;  %s1484_s23 = sphi %s1545_s23, %s1883_s23  }
   0x7   : > { %s46_s28 = ssub.s32 %s1496_s26, %s1567_s27  ;;  %s49_s29 = sadd.s32 1, %s1492_s25 }
   0x8   : > { %p47_p0 = scmp.eq.s32.totalorder %s46_s28, 0  ;;  %p56_p1 = scmp.ne.s32.totalorder %s1492_s25, %s1488_s24 }
   0x9   : > { %p57_p2 = scmp.eq.s32.totalorder %s1496_s26, 0  ;;  %p62_p3 = scmp.ne.s32.totalorder %s1488_s24, %s1484_s23 }
   0xa   : > { %s1577_s30 = scalar_select %p47_p0, %s1492_s25, %s49_s29  }
   0xb   : > { %p58_p4 = por %p57_p2, %p56_p1  ;;  %p63_p5 = scmp.eq.s32.totalorder %s1564_s5, 0 }
   0xc   : > { %p1339_p6 = scmp.lt.s32.totalorder %s1496_s26, 3  ;;  %s210_s8 = sand.u32 1, %s1492_s25  }
   0xd   : > { %p1581_p7 = por %p63_p5, %p62_p3  ;;  %s1330_s9 = smul.u32 384, %s210_s8 }
   0xe   : > { %s1331_s10 = smul.u32 6144, %s1496_s26  ;;  %p1587_p8 = pnand %p1339_p6, %p58_p4 }
   0xf   : > { %s214_s15 = scalar_lea.vmem [#allocation4], %s1330_s9  ;;  %s1599_s17 = scalar_lea.sflag [#allocation5], %s210_s8 }
  0x10   : > { %s1594_s14 = scalar_lea.hbm %s1874_s1, %s1331_s10  ;;  %s221_s16 = sshll.u32 %s214_s15, 4  ;;  %s1596_s16 = int_to_ptr.vmem [resolvable:$true] %s221_s16 }
  0x11   : > { %s1432_s18 = scalar_lea.hbm %s1594_s14, 6144  ;;  %p1434_p11 = pneg %p1587_p8 }
  0x12   : > { %p1433_p10 = scmp.ne.s32.totalorder %s1594_s14, %s1432_s18  ;;  %s1437_s21 = scalar_lea.hbm %s1874_s1, 18432 }
  0x13   : > { %p1438_p0 = scmp.lt.u32.totalorder %s1594_s14, %s1874_s1  ;;  %p1439_p1 = scmp.lt.u32.totalorder %s1437_s21, %s1432_s18 }
  0x14   : > { %p1435_p12 = pnand %p1434_p11, %p1433_p10  ;;  %p1441_p3 = scmp.lt.u32.totalorder %s1432_s18, %s1594_s14 }
  0x15   : > { %p1440_p2 = por %p1439_p1, %p1438_p0 }
  0x16   : > { %p1436_p13 = pneg %p1435_p12 }
  0x17   : > { %p1442_p4 = por %p1441_p3, %p1440_p2 }
  0x19   : > { %p1443_p5 = pnand %p1442_p4, %p1436_p13 }
  0x1b   : > { %1446 = shalt.err (!%p1443_p5)
}
  0x1c   : > { %s1447_s28 = scalar_lea.vmem %s1596_s16, 6144  ;;  %s1498_s29 = smov [#allocation4]  }
  0x1d   : > { %p1448_p6 = scmp.ne.s32.totalorder %s1596_s16, %s1447_s28  ;;  %s1452_s8 = sshll.u32 %s1498_s29, 4  ;;  %s1453_s8 = int_to_ptr.vmem [resolvable:$false] %s1452_s8 }
  0x1e   : > { %s1454_s9 = scalar_lea.vmem %s1453_s8, 12288  ;;  %p1455_p9 = scmp.lt.s32.totalorder %s1596_s16, %s1453_s8 }
  0x1f   : > { %p1450_p10 = pnand %p1448_p6, %p1434_p11  ;;  %p1456_p0 = scmp.lt.s32.totalorder %s1454_s9, %s1447_s28 }
  0x21   : > { %p1451_p12 = pneg %p1450_p10  ;;  %p1457_p1 = por %p1456_p0, %p1455_p9 }
  0x23   : > { %p1458_p2 = pnand %p1457_p1, %p1451_p12 }
  0x25   : > { %1461 = shalt.err (!%p1458_p2)
}
  0x26   : > { %s1499_s10 = smov 64   ;;  %s1500_s12 = smov 4  }
  0x27   : > { %1338 = dma.hbm_to_vmem [thread:$0]  (!%p1587_p8), %s1594_s14, 6144, %s1596_s16, %s1599_s17, %s1499_s10, %s1499_s10, %s1500_s12  }
  0x28   : > { %p243_p11 = scmp.lt.s32.totalorder %s1496_s26, 4  ;;  %p1882_p13 = scmp.ge.s32.totalorder %s1496_s26, 1 }
  0x2a   : > { %p244_p3 = pnand %p1882_p13, %p243_p11 }
  0x2b   : > { %s249_s13 = sand.u32 (!%p244_p3), 1, %s1488_s24  }
  0x2c   : > { %247 = sbr.rel (%p244_p3) target bundleno = 1501 (0x5dd), region = 44  ;;  %s250_s18 = scalar_lea.sflag (!%p244_p3), [#allocation5], %s249_s13 }
  0x2d   : > { %s1332_s15 = smul.u32 (!%p244_p3), 384, %s249_s13 }
  0x2f   : > { %s1631_s19 = scalar_lea.vmem (!%p244_p3), [#allocation4], %s1332_s15 }
  0x33   : > { %1479 = dma.done.wait (%p1581_p7), %s250_s18, 6144  }
  0x34   : > { %1481 = vsyncadd (%p1581_p7), %s250_s18, 4294961152  ;;  %p285_p9 = scmp.lt.s32.totalorder %s1564_s5, 2  ;;  %p1175_p8 = scmp.ne.s32.totalorder %s1564_s5, 0 }
  0x35   : > { %v298_v1 = vld [vmem:[%s1873_s0] sm:$0xff] (!%p1175_p8)  ;;  %v299_v2 = vld [vmem:[%s1873_s0 + $0x8] sm:$0xff] (!%p1175_p8) }
  0x36   : > { %s286_s11 = scalar_select %p285_p9, %s1564_s5, 2 }
  0x37   : > { %297 = sbr.rel (%p1175_p8) target bundleno = 62 (0x3e), region = 52  ;;  %300 = vst [vmem:[#allocation2] sm:$0xff] (!%p1175_p8), %v298_v1  ;;  %301 = vst [vmem:[#allocation2 + $0x8] sm:$0xff] (!%p1175_p8), %v299_v2 }
  0x38   : > { %s1173_s14 = sshll.u32 %s286_s11, 1 }
  0x39   : > { %s1642_s17 = scalar_lea.vmem %s1875_s2, %s1173_s14  ;;  %s1647_s22 = scalar_lea.vmem %s1876_s3, %s1173_s14 }
  0x3e PF: > { %v1380_v3 = vld [vmem:[%s1631_s19 + $0x40] sm:$0xff]   ;;  %v302_v4 = vlaneseq  ;;  %v1501_v5 = vmov 0.0   ;;  %vm1502_vm0 = vmmov 0   ;;  %v1383_v8 = vld [vmem:[%s1631_s19 + $0x48] sm:$0xff]   ;;  %v1386_v12 = vld [vmem:[%s1631_s19 + $0x50] sm:$0xff]   ;;  %v1503_v26 = vmov 1.0  }
  0x3f   : > { %1290 = vmatprep.subr.bf16.mxu1 %v1501_v5  ;;  %v1381_v6 = vld [vmem:[%s1631_s19] sm:$0xff]   ;;  %1228 = vmatprep.subr.bf16.mxu0 %v1380_v3  ;;  %v1384_v9 = vld [vmem:[%s1631_s19 + $0x8] sm:$0xff]   ;;  %v1387_v13 = vld [vmem:[%s1631_s19 + $0x10] sm:$0xff]   ;;  %s1504_s8 = smov 16   ;;  %s1505_s9 = smov 32  }
  0x40   : > { %v1382_v7 = vld [vmem:[%s1631_s19 + $0x80] sm:$0xff]   ;;  %1306 = vmatprep.mubr.msk.bf16.mxu1 %vm1502_vm0, %v1501_v5  ;;  %1229 = vmatpush3.bf16.msra.mxu0 %v1381_v6  ;;  %v1664_v10 = vshrl.u32 %v302_v4, 7  ;;  %v1385_v11 = vld [vmem:[%s1631_s19 + $0x88] sm:$0xff]   ;;  %v1388_v14 = vld [vmem:[%s1631_s19 + $0x90] sm:$0xff]   ;;  %s1506_s10 = smov 64   ;;  %p1224_p7 = scmp.ne.s32.totalorder %s1564_s5, 2 }
  0x41   : > { %1291 = vmatpush3.bf16.msra.mxu1 %v1382_v7  ;;  %1230 = vmatprep.subr.bf16.mxu0 %v1383_v8  ;;  %v1389_v16 = vld [vmem:[%s1631_s19 + $0x58] sm:$0xff]   ;;  %v1392_v20 = vld [vmem:[%s1631_s19 + $0x60] sm:$0xff]   ;;  %v1395_v24 = vld [vmem:[%s1631_s19 + $0x68] sm:$0xff]   ;;  %vm1088_vm7 = vcmask (!%p1224_p7), 1041409   ;;  %vm1091_vm8 = vcmask (!%p1224_p7), 1041408   ;;  %vm1103_vm9 = vcmask (!%p1224_p7), 1024  }
  0x42   : > { %1292 = vmatprep.subr.bf16.mxu1 %v1501_v5  ;;  %v304_v15 = vadd.s32 8, %v1664_v10  ;;  %v1390_v17 = vld [vmem:[%s1631_s19 + $0x18] sm:$0xff]   ;;  %v309_v19 = vand.u32 7, %v1664_v10  ;;  %v1393_v22 = vld [vmem:[%s1631_s19 + $0x20] sm:$0xff]   ;;  %v1396_v25 = vld [vmem:[%s1631_s19 + $0x28] sm:$0xff]   ;;  %vm331_vm5 = vcmp.lt.s32.totalorder %v1664_v10, 1 }
  0x43   : > { %v1391_v18 = vld [vmem:[%s1631_s19 + $0x98] sm:$0xff]   ;;  %v1394_v23 = vld [vmem:[%s1631_s19 + $0xa0] sm:$0xff]   ;;  %v1397_v28 = vld [vmem:[%s1631_s19 + $0xa8] sm:$0xff]   ;;  %vm338_vm6 = vcmp.lt.s32.totalorder %v1664_v10, 7 }
  0x44   : > { %1231 = vmatpush3.bf16.msra.mxu0 %v1384_v9  ;;  %v316_v21 = vand.u32 7, %v304_v15  ;;  %vm319_vm1 = vcmp.eq.s32.totalorder %v309_v19, 0  ;;  %v1398_v30 = vld [vmem:[%s1631_s19 + $0x70] sm:$0xff]   ;;  %vm323_vm3 = vcmp.eq.s32.totalorder %v309_v19, 7  ;;  %v1401_v33 = vld [vmem:[%s1631_s19 + $0x78] sm:$0xff]  }
  0x45   : > { %1293 = vmatpush3.bf16.msra.mxu1 %v1385_v11  ;;  %1232 = vmatprep.subr.bf16.mxu0 %v1386_v12  ;;  %v1684_v27 = vsel %vm319_vm1, 0.0, %v1503_v26  ;;  %v1399_v31 = vld [vmem:[%s1631_s19 + $0x30] sm:$0xff]   ;;  %v1695_v34 = vsel %vm323_vm3, 0.0, %v1503_v26  ;;  %v1402_v38 = vld [vmem:[%s1631_s19 + $0x38] sm:$0xff]  }
  0x46   : > { %1294 = vmatprep.subr.bf16.mxu1 %v1501_v5  ;;  %vm320_vm2 = vcmp.eq.s32.totalorder %v316_v21, 0  ;;  %vm324_vm4 = vcmp.eq.s32.totalorder %v316_v21, 7  ;;  %v1400_v32 = vld [vmem:[%s1631_s19 + $0xb0] sm:$0xff]   ;;  %v1403_v43 = vld [vmem:[%s1631_s19 + $0xb8] sm:$0xff]  }
  0x47   : > { %v1687_v29 = vsel %vm320_vm2, 0.0, %v1503_v26  ;;  %v1697_v35 = vld [vmem:[#allocation2] sm:$0xff]  ;;  %v1699_v36 = vld [vmem:[#allocation2 + $0x8] sm:$0xff]  ;;  %v1701_v37 = vsel %vm324_vm4, 0.0, %v1503_v26 }
  0x48   : > { %1233 = vmatpush3.bf16.msra.mxu0 %v1387_v13  ;;  %v344_v39 = vpack.c.bf16 %v1699_v36, %v1697_v35  ;;  %v329_v40 = vrot.slane %v1697_v35, 7  ;;  %v330_v41 = vrot.slane %v1699_v36, 7  ;;  %v336_v42 = vrot.slane %v1697_v35, 1  ;;  %v1407_v26 = vld [vmem:[%s1631_s19 + $0x108] sm:$0xff]  }
  0x49   : > { %1295 = vmatpush3.bf16.msra.mxu1 %v1388_v14  ;;  %1234 = vmatprep.subr.bf16.mxu0 %v1389_v16  ;;  %v337_v44 = vrot.slane %v1699_v36, 1 }
  0x4a   : > { %1296 = vmatprep.subr.bf16.mxu1 %v1501_v5  ;;  %570 = vmatprep.mubr.bf16.mxu0 %v344_v39  ;;  %v332_v45 = vsel %vm331_vm5, %v329_v40, %v330_v41  ;;  %v333_v46 = vsel %vm331_vm5, %v330_v41, %v329_v40  ;;  %v1414_v39 = vld [vmem:[%s1631_s19 + $0xd8] sm:$0xff]   ;;  %v1416_v41 = vld [vmem:[%s1631_s19 + $0x120] sm:$0xff]  }
  0x4b   : > { %v334_v47 = vmul.f32 %v333_v46, %v1684_v27  ;;  %v335_v48 = vmul.f32 %v332_v45, %v1687_v29  ;;  %v339_v49 = vsel %vm338_vm6, %v336_v42, %v337_v44  ;;  %v340_v50 = vsel %vm338_vm6, %v337_v44, %v336_v42  ;;  %v1415_v40 = vld [vmem:[%s1631_s19 + $0x158] sm:$0xff]   ;;  %v1417_v42 = vld [vmem:[%s1631_s19 + $0xe0] sm:$0xff]   ;;  %v1419_v44 = vld [vmem:[%s1631_s19 + $0x128] sm:$0xff]  }
  0x4c   : > { %1235 = vmatpush3.bf16.msra.mxu0 %v1390_v17  ;;  %v341_v51 = vmul.f32 %v339_v49, %v1695_v34  ;;  %v342_v53 = vmul.f32 %v340_v50, %v1701_v37  ;;  %v1420_v45 = vld [vmem:[%s1631_s19 + $0xe8] sm:$0xff]   ;;  %v1424_v49 = vld [vmem:[%s1631_s19 + $0x170] sm:$0xff]   ;;  %v1425_v50 = vld [vmem:[%s1631_s19 + $0x138] sm:$0xff]  }
  0x4d   : > { %1297 = vmatpush3.bf16.msra.mxu1 %v1391_v18  ;;  %1236 = vmatprep.subr.bf16.mxu0 %v1392_v20  ;;  %v343_v52 = vpack.c.bf16 %v335_v48, %v334_v47  ;;  %v1421_v46 = vld [vmem:[%s1631_s19 + $0x168] sm:$0xff]   ;;  %v1422_v47 = vld [vmem:[%s1631_s19 + $0x130] sm:$0xff]  }
  0x4e   : > { %1298 = vmatprep.subr.bf16.mxu1 %v1501_v5  ;;  %v345_v54 = vpack.c.bf16 %v342_v53, %v341_v51  ;;  %v1423_v48 = vld [vmem:[%s1631_s19 + $0xf0] sm:$0xff]   ;;  %v1426_v51 = vld [vmem:[%s1631_s19 + $0xf8] sm:$0xff]  }
  0x50   : > { %1237 = vmatpush3.bf16.msra.mxu0 %v1393_v22 }
  0x51   : > { %1299 = vmatpush3.bf16.msra.mxu1 %v1394_v23  ;;  %1238 = vmatprep.subr.bf16.mxu0 %v1395_v24  ;;  %v1404_v23 = vld [vmem:[%s1631_s19 + $0x100] sm:$0xff]  }
  0x52   : > { %1300 = vmatprep.subr.bf16.mxu1 %v1501_v5  ;;  %v1405_v24 = vld [vmem:[%s1631_s19 + $0xc0] sm:$0xff]  }
  0x54   : > { %1239 = vmatpush3.bf16.msra.mxu0 %v1396_v25  ;;  %v1406_v25 = vld [vmem:[%s1631_s19 + $0x140] sm:$0xff]  }
  0x55   : > { %1301 = vmatpush3.bf16.msra.mxu1 %v1397_v28  ;;  %1240 = vmatprep.subr.bf16.mxu0 %v1398_v30  ;;  %v1408_v28 = vld [vmem:[%s1631_s19 + $0xc8] sm:$0xff]  }
  0x56   : > { %1302 = vmatprep.subr.bf16.mxu1 %v1501_v5  ;;  %v1409_v30 = vld [vmem:[%s1631_s19 + $0x148] sm:$0xff]  }
  0x58   : > { %1241 = vmatpush3.bf16.msra.mxu0 %v1399_v31  ;;  %v1410_v31 = vld [vmem:[%s1631_s19 + $0x110] sm:$0xff]  }
  0x59   : > { %1303 = vmatpush3.bf16.msra.mxu1 %v1400_v32  ;;  %1242 = vmatprep.subr.bf16.mxu0 %v1401_v33  ;;  %v1411_v32 = vld [vmem:[%s1631_s19 + $0xd0] sm:$0xff]  }
  0x5a   : > { %1304 = vmatprep.subr.bf16.mxu1 %v1501_v5  ;;  %v1412_v33 = vld [vmem:[%s1631_s19 + $0x150] sm:$0xff]  }
  0x5c   : > { %1243 = vmatpush3.bf16.msra.mxu0 %v1402_v38  ;;  %v1413_v38 = vld [vmem:[%s1631_s19 + $0x118] sm:$0xff]  }
  0x5d   : > { %1305 = vmatpush3.bf16.msra.mxu1 %v1403_v43  ;;  %1259 = vmatprep.subr.bf16.mxu0 %v1404_v23  ;;  %v1418_v43 = vld [vmem:[%s1631_s19 + $0x160] sm:$0xff]   ;;  %v680_v23 = vld [vmem:[%s1647_s22] sm:$0x1] }
  0x5e   : > { %1310 = vmatprep.subr.bf16.mxu1 %v1501_v5 }
  0x5f   : > { %571 = vmatmul.mubr.bf16.vlgmr.msra.gmra.mrb[0].mxu0 %v343_v52  ;;  %v1427_v52 = vld [vmem:[%s1631_s19 + $0x178] sm:$0xff]  }
  0x60   : > { %1307 = vmatmul.mubr.bf16.vlgmr.msra.gmra.mrb[0].mxu1 %v345_v54  ;;  %1260 = vmatpush3.bf16.msra.mxu0 %v1405_v24 }
  0x61   : > { %1326 = vmatprep.mubr.msk.bf16.mxu1 %vm1502_vm0, %v1501_v5  ;;  %1311 = vmatpush3.bf16.msra.mxu1 %v1406_v25 }
  0x62   : > { %1312 = vmatprep.subr.bf16.mxu1 %v1501_v5  ;;  %1261 = vmatprep.subr.bf16.mxu0 %v1407_v26 }
  0x64   : > { %1262 = vmatpush3.bf16.msra.mxu0 %v1408_v28 }
  0x65   : > { %1313 = vmatpush3.bf16.msra.mxu1 %v1409_v30  ;;  %1263 = vmatprep.subr.bf16.mxu0 %v1410_v31 }
  0x66   : > { %1314 = vmatprep.subr.bf16.mxu1 %v1501_v5 }
  0x68   : > { %1264 = vmatpush3.bf16.msra.mxu0 %v1411_v32 }
  0x69   : > { %1315 = vmatpush3.bf16.msra.mxu1 %v1412_v33  ;;  %1265 = vmatprep.subr.bf16.mxu0 %v1413_v38 }
  0x6a   : > { %1316 = vmatprep.subr.bf16.mxu1 %v1501_v5 }
  0x6c   : > { %1266 = vmatpush3.bf16.msra.mxu0 %v1414_v39 }
  0x6d   : > { %1317 = vmatpush3.bf16.msra.mxu1 %v1415_v40  ;;  %1267 = vmatprep.subr.bf16.mxu0 %v1416_v41 }
  0x6e   : > { %1318 = vmatprep.subr.bf16.mxu1 %v1501_v5 }
  0x70   : > { %1268 = vmatpush3.bf16.msra.mxu0 %v1417_v42 }
  0x71   : > { %1319 = vmatpush3.bf16.msra.mxu1 %v1418_v43  ;;  %1269 = vmatprep.subr.bf16.mxu0 %v1419_v44 }
  0x72   : > { %1320 = vmatprep.subr.bf16.mxu1 %v1501_v5 }
  0x74   : > { %1270 = vmatpush3.bf16.msra.mxu0 %v1420_v45 }
  0x75   : > { %1321 = vmatpush3.bf16.msra.mxu1 %v1421_v46  ;;  %1271 = vmatprep.subr.bf16.mxu0 %v1422_v47 }
  0x76   : > { %1322 = vmatprep.subr.bf16.mxu1 %v1501_v5 }
  0x78   : > { %1272 = vmatpush3.bf16.msra.mxu0 %v1423_v48 }
  0x79   : > { %1323 = vmatpush3.bf16.msra.mxu1 %v1424_v49  ;;  %1273 = vmatprep.subr.bf16.mxu0 %v1425_v50 }
  0x7a   : > { %1324 = vmatprep.subr.bf16.mxu1 %v1501_v5 }
  0x7c   : > { %1274 = vmatpush3.bf16.msra.mxu0 %v1426_v51 }
  0x7d   : > { %1325 = vmatpush3.bf16.msra.mxu1 %v1427_v52 }
 0x132   : > { %v1244_v55 = vpop.f32.mrb[0].mxu0 }
 0x133   : > { %v613_v56 = vpop.f32.mrb[0].mxu1  ;;  %v1245_v57 = vpop.f32.mrb[1].mxu0 }
 0x134   : > { %v1246_v58 = vadd.f32 %v1245_v57, %v1244_v55  ;;  %v1308_v59 = vpop.f32.mrb[1].mxu1  ;;  %v1247_v60 = vpop.f32.mrb[2].mxu0 }
 0x135   : > { %v616_v61 = vpop.f32.mrb[2].mxu1  ;;  %v1248_v62 = vpop.f32.mrb[3].mxu0 }
 0x136   : > { %v1729_v63 = vadd.f32 %v1246_v58, %v613_v56  ;;  %v1249_v0 = vadd.f32 %v1248_v62, %v1247_v60  ;;  %v1309_v1 = vpop.f32.mrb[3].mxu1 }
 0x138   : > { %v1731_v2 = vadd.f32 %v1249_v0, %v616_v61  ;;  %622 = vrot.lane.b32.xlu0 %v1729_v63, %s1504_s8  ;;  %v620_v3 = vmul.f32 %v1729_v63, %v1729_v63 }
 0x13a   : > { %626 = vrot.lane.b32.xlu1 %v620_v3, %s1504_s8  ;;  %v621_v4 = vmul.f32 %v1731_v2, %v1731_v2 }
 0x13c   : > { %624 = vrot.lane.b32.xlu0 %v1731_v2, %s1504_s8 }
 0x13e   : > { %628 = vrot.lane.b32.xlu1 %v621_v4, %s1504_s8 }
 0x1aa   : > { %v623_v6 = vpop.permute.xlu0 %622 }
 0x1ab   : > { %v630_v7 = vadd.f32 %v623_v6, %v1729_v63 }
 0x1ac   : > { %v627_v8 = vpop.permute.xlu1 %626 }
 0x1ad   : > { %634 = vrot.lane.b32.xlu0 %v630_v7, %s1505_s9  ;;  %v632_v11 = vadd.f32 %v627_v8, %v620_v3 }
 0x1ae   : > { %v625_v9 = vpop.permute.xlu0 %624 }
 0x1af   : > { %v631_v12 = vadd.f32 %v625_v9, %v1731_v2 }
 0x1b0   : > { %v629_v13 = vpop.permute.xlu1 %628 }
 0x1b1   : > { %636 = vrot.lane.b32.xlu1 %v631_v12, %s1505_s9  ;;  %638 = vrot.lane.b32.xlu0 %v632_v11, %s1505_s9  ;;  %v633_v14 = vadd.f32 %v629_v13, %v621_v4 }
 0x1b5   : > { %640 = vrot.lane.b32.xlu1 %v633_v14, %s1505_s9 }
 0x21f   : > { %v635_v15 = vpop.permute.xlu0 %634 }
 0x220   : > { %v1749_v16 = vadd.f32 %v635_v15, %v630_v7 }
 0x222   : > { %646 = vrot.lane.b32.xlu0 %v1749_v16, %s1506_s10 }
 0x223   : > { %v639_v17 = vpop.permute.xlu0 %638  ;;  %v637_v18 = vpop.permute.xlu1 %636 }
 0x224   : > { %v1753_v19 = vadd.f32 %v639_v17, %v632_v11  ;;  %v1755_v20 = vadd.f32 %v637_v18, %v631_v12 }
 0x226   : > { %650 = vrot.lane.b32.xlu0 %v1753_v19, %s1506_s10  ;;  %648 = vrot.lane.b32.xlu1 %v1755_v20, %s1506_s10 }
 0x227   : > { %v641_v21 = vpop.permute.xlu1 %640 }
 0x228   : > { %v1761_v22 = vadd.f32 %v641_v21, %v633_v14 }
 0x22a   : > { %652 = vrot.lane.b32.xlu1 %v1761_v22, %s1506_s10 }
 0x294   : > { %v647_v53 = vpop.permute.xlu0 %646 }
 0x295   : > { %v654_v55 = vadd.f32 %v647_v53, %v1749_v16 }
 0x298   : > { %v649_v54 = vpop.permute.xlu1 %648  ;;  %v651_v57 = vpop.permute.xlu0 %650 }
 0x299   : > { %v655_v56 = vadd.f32 %v649_v54, %v1755_v20  ;;  %v656_v60 = vadd.f32 %v651_v57, %v1753_v19  ;;  %v678_v19 = vld [vmem:[%s1642_s17] sm:$0x1]  ;;  %v1802_v20 = vsub.s32 0, %v1664_v10 }
 0x29b   : > { %v658_v58 = vadd.f32 %v655_v56, %v654_v55 }
 0x29c   : > { %v653_v59 = vpop.permute.xlu1 %652 }
 0x29d   : > { %v659_v61 = vrot.slane %v658_v58, 4  ;;  %v657_v62 = vadd.f32 %v653_v59, %v1761_v22 }
 0x29f   : > { %v660_v5 = vadd.f32 %v659_v61, %v658_v58  ;;  %v665_v0 = vadd.f32 %v657_v62, %v656_v60 }
 0x2a1   : > { %v661_v1 = vrot.slane %v660_v5, 2  ;;  %v666_v3 = vrot.slane %v665_v0, 4 }
 0x2a3   : > { %v662_v4 = vadd.f32 %v661_v1, %v660_v5  ;;  %v667_v6 = vadd.f32 %v666_v3, %v665_v0 }
 0x2a5   : > { %v663_v7 = vrot.slane %v662_v4, 1  ;;  %v668_v8 = vrot.slane %v667_v6, 2 }
 0x2a7   : > { %v664_v9 = vadd.f32 %v663_v7, %v662_v4  ;;  %v669_v11 = vadd.f32 %v668_v8, %v667_v6 }
 0x2a9   : > { %v672_v12 = vmul.f32 0.0078125, %v664_v9  ;;  %v670_v13 = vrot.slane %v669_v11, 1 }
 0x2ab   : > { %v671_v14 = vadd.f32 %v670_v13, %v669_v11  ;;  %v674_v15 = vmul.f32 %v672_v12, %v672_v12 }
 0x2ad   : > { %v673_v16 = vmul.f32 0.0078125, %v671_v14 }
 0x2af   : > { %v675_v17 = vsub.f32 %v673_v16, %v674_v15 }
 0x2b1   : > { %v676_v18 = vadd.f32 1e-05, %v675_v17 }
 0x2b3   : > { %1428 = vrsqrt.f32 %v676_v18 }
 0x2bd   : > { %v1429_v21 = vpop.eup %1428 }
 0x2be   : > { %v679_v22 = vmul.f32 %v1429_v21, %v678_v19 }
 0x2c0   : > { %v681_v24 = vmul.f32 %v679_v22, %v672_v12  ;;  %v686_v25 = vrot.slane %v679_v22, %v1802_v20 }
 0x2c2   : > { %v682_v26 = vsub.f32 %v680_v23, %v681_v24  ;;  %v687_v28 = vmul.f32 %v686_v25, %v1729_v63  ;;  %v688_v30 = vmul.f32 %v686_v25, %v1731_v2 }
 0x2c4   : > { %v692_v31 = vrot.slane %v682_v26, %v1802_v20 }
 0x2c6   : > { %v693_v32 = vadd.f32 %v692_v31, %v687_v28  ;;  %v694_v33 = vadd.f32 %v692_v31, %v688_v30 }
 0x2c8   : > { %v695_v38 = vmax.f32 %v693_v32, 0.0  ;;  %v696_v39 = vmax.f32 %v694_v33, 0.0 }
 0x2ca   : > { %v697_v40 = vrot.slane %v695_v38, 7  ;;  %v698_v41 = vrot.slane %v696_v39, 7  ;;  %v703_v42 = vrot.slane %v695_v38, 1  ;;  %v704_v43 = vrot.slane %v696_v39, 1 }
 0x2cb   : > { %v710_v44 = vpack.c.bf16 %v696_v39, %v695_v38 }
 0x2cc   : > { %v699_v45 = vsel %vm331_vm5, %v697_v40, %v698_v41  ;;  %v700_v46 = vsel %vm331_vm5, %v698_v41, %v697_v40  ;;  %v705_v63 = vsel %vm338_vm6, %v703_v42, %v704_v43  ;;  %v706_v2 = vsel %vm338_vm6, %v704_v43, %v703_v42 }
 0x2cd   : > { %936 = vmatprep.mubr.bf16.mxu0 %v710_v44  ;;  %v701_v47 = vmul.f32 %v700_v46, %v1684_v27  ;;  %v702_v48 = vmul.f32 %v699_v45, %v1687_v29  ;;  %v707_v49 = vmul.f32 %v705_v63, %v1695_v34  ;;  %v708_v50 = vmul.f32 %v706_v2, %v1701_v37 }
 0x2cf   : > { %v709_v51 = vpack.c.bf16 %v702_v48, %v701_v47  ;;  %v711_v52 = vpack.c.bf16 %v708_v50, %v707_v49  ;;  %v1044_v49 = vld [vmem:[%s1642_s17 + $0x1] sm:$0x1] }
 0x2d1   : > { %937 = vmatmul.mubr.bf16.vlgmr.msra.gmra.mrb[4].mxu0 %v709_v51  ;;  %1327 = vmatmul.mubr.bf16.vlgmr.msra.gmra.mrb[4].mxu1 %v711_v52  ;;  %v1046_v52 = vld [vmem:[%s1647_s22 + $0x1] sm:$0x1] }
 0x3a4   : > { %v1275_v53 = vpop.f32.mrb[4].mxu0  ;;  %v979_v54 = vpop.f32.mrb[4].mxu1 }
 0x3a5   : > { %v1276_v55 = vpop.f32.mrb[5].mxu0  ;;  %v1328_v56 = vpop.f32.mrb[5].mxu1 }
 0x3a6   : > { %v1277_v57 = vadd.f32 %v1276_v55, %v1275_v53  ;;  %v1278_v10 = vpop.f32.mrb[6].mxu0  ;;  %v982_v58 = vpop.f32.mrb[6].mxu1 }
 0x3a7   : > { %v1279_v59 = vpop.f32.mrb[7].mxu0  ;;  %v1329_v60 = vpop.f32.mrb[7].mxu1 }
 0x3a8   : > { %v1821_v27 = vadd.f32 %v1277_v57, %v979_v54  ;;  %v1280_v29 = vadd.f32 %v1279_v59, %v1278_v10 }
 0x3aa   : > { %v1823_v61 = vadd.f32 %v1280_v29, %v982_v58  ;;  %988 = vrot.lane.b32.xlu0 %v1821_v27, %s1504_s8  ;;  %v986_v34 = vmul.f32 %v1821_v27, %v1821_v27 }
 0x3ac   : > { %990 = vrot.lane.b32.xlu1 %v1823_v61, %s1504_s8  ;;  %v987_v37 = vmul.f32 %v1823_v61, %v1823_v61 }
 0x3ae   : > { %992 = vrot.lane.b32.xlu0 %v986_v34, %s1504_s8 }
 0x3b0   : > { %994 = vrot.lane.b32.xlu1 %v987_v37, %s1504_s8 }
 0x41c   : > { %v989_v62 = vpop.permute.xlu0 %988 }
 0x41d   : > { %v996_v5 = vadd.f32 %v989_v62, %v1821_v27 }
 0x41e   : > { %v991_v0 = vpop.permute.xlu1 %990 }
 0x41f   : > { %v997_v1 = vadd.f32 %v991_v0, %v1823_v61  ;;  %1000 = vrot.lane.b32.xlu0 %v996_v5, %s1505_s9 }
 0x420   : > { %v993_v3 = vpop.permute.xlu0 %992 }
 0x421   : > { %v998_v4 = vadd.f32 %v993_v3, %v986_v34  ;;  %1002 = vrot.lane.b32.xlu1 %v997_v1, %s1505_s9 }
 0x422   : > { %v995_v6 = vpop.permute.xlu1 %994 }
 0x423   : > { %v999_v7 = vadd.f32 %v995_v6, %v987_v37  ;;  %1004 = vrot.lane.b32.xlu0 %v998_v4, %s1505_s9 }
 0x425   : > { %1006 = vrot.lane.b32.xlu1 %v999_v7, %s1505_s9 }
 0x491   : > { %v1001_v8 = vpop.permute.xlu0 %1000 }
 0x492   : > { %v1008_v9 = vadd.f32 %v1001_v8, %v996_v5 }
 0x493   : > { %v1003_v11 = vpop.permute.xlu1 %1002 }
 0x494   : > { %v1009_v12 = vadd.f32 %v1003_v11, %v997_v1  ;;  %1012 = vrot.lane.b32.xlu0 %v1008_v9, %s1506_s10 }
 0x495   : > { %v1005_v13 = vpop.permute.xlu0 %1004 }
 0x496   : > { %v1010_v14 = vadd.f32 %v1005_v13, %v998_v4  ;;  %1014 = vrot.lane.b32.xlu1 %v1009_v12, %s1506_s10  ;;  %v1225_v13 = vld [vmem:[#allocation3] ss:$0 sm:$0xff] (!%p1224_p7) }
 0x497   : > { %v1007_v15 = vpop.permute.xlu1 %1006 }
 0x498   : > { %v1011_v16 = vadd.f32 %v1007_v15, %v999_v7  ;;  %1016 = vrot.lane.b32.xlu0 %v1010_v14, %s1506_s10 }
 0x49a   : > { %1018 = vrot.lane.b32.xlu1 %v1011_v16, %s1506_s10 }
 0x506   : > { %v1013_v17 = vpop.permute.xlu0 %1012 }
 0x507   : > { %v1020_v19 = vadd.f32 %v1013_v17, %v1008_v9 }
 0x508   : > { %v1015_v18 = vpop.permute.xlu1 %1014 }
 0x509   : > { %v1021_v21 = vadd.f32 %v1015_v18, %v1009_v12 }
 0x50a   : > { %v1017_v22 = vpop.permute.xlu0 %1016 }
 0x50b   : > { %v1024_v23 = vadd.f32 %v1021_v21, %v1020_v19  ;;  %v1022_v26 = vadd.f32 %v1017_v22, %v1010_v14 }
 0x50c   : > { %v1019_v24 = vpop.permute.xlu1 %1018 }
 0x50d   : > { %v1025_v25 = vrot.slane %v1024_v23, 4  ;;  %v1023_v28 = vadd.f32 %v1019_v24, %v1011_v16 }
 0x50f   : > { %v1026_v30 = vadd.f32 %v1025_v25, %v1024_v23  ;;  %v1031_v31 = vadd.f32 %v1023_v28, %v1022_v26 }
 0x511   : > { %v1027_v32 = vrot.slane %v1026_v30, 2  ;;  %v1032_v33 = vrot.slane %v1031_v31, 4 }
 0x513   : > { %v1028_v38 = vadd.f32 %v1027_v32, %v1026_v30  ;;  %v1033_v39 = vadd.f32 %v1032_v33, %v1031_v31 }
 0x515   : > { %v1029_v40 = vrot.slane %v1028_v38, 1  ;;  %v1034_v41 = vrot.slane %v1033_v39, 2 }
 0x517   : > { %v1030_v42 = vadd.f32 %v1029_v40, %v1028_v38  ;;  %v1035_v43 = vadd.f32 %v1034_v41, %v1033_v39 }
 0x519   : > { %v1038_v44 = vmul.f32 0.0078125, %v1030_v42  ;;  %v1036_v45 = vrot.slane %v1035_v43, 1 }
 0x51b   : > { %v1037_v46 = vadd.f32 %v1036_v45, %v1035_v43  ;;  %v1040_v63 = vmul.f32 %v1038_v44, %v1038_v44 }
 0x51d   : > { %v1039_v2 = vmul.f32 0.0078125, %v1037_v46 }
 0x51f   : > { %v1041_v47 = vsub.f32 %v1039_v2, %v1040_v63 }
 0x521   : > { %v1042_v48 = vadd.f32 1e-05, %v1041_v47 }
 0x523   : > { %1430 = vrsqrt.f32 %v1042_v48 }
 0x52d   : > { %v1431_v50 = vpop.eup %1430 }
 0x52e   : > { %v1045_v51 = vmul.f32 %v1431_v50, %v1044_v49 }
 0x530   : > { %v1047_v53 = vmul.f32 %v1045_v51, %v1038_v44  ;;  %v1052_v54 = vrot.slane %v1045_v51, %v1802_v20 }
 0x532   : > { %v1048_v55 = vsub.f32 %v1046_v52, %v1047_v53  ;;  %v1053_v56 = vmul.f32 %v1052_v54, %v1821_v27  ;;  %v1054_v57 = vmul.f32 %v1052_v54, %v1823_v61  ;;  %v1071_v27 = vld [vmem:[%s1877_s4] sm:$0xff] (!%p1224_p7) }
 0x534   : > { %v1058_v10 = vrot.slane %v1048_v55, %v1802_v20 }
 0x536   : > { %v1059_v58 = vadd.f32 %v1058_v10, %v1053_v56  ;;  %v1060_v59 = vadd.f32 %v1058_v10, %v1054_v57  ;;  %1070 = sbr.rel (%p1224_p7) target bundleno = 1501 (0x5dd), region = 56 }
 0x538   : > { %v1061_v60 = vadd.f32 %v1059_v58, %v1697_v35  ;;  %v1062_v29 = vadd.f32 %v1060_v59, %v1699_v36 }
 0x53a   : > { %v1063_v34 = vmax.f32 %v1061_v60, 0.0  ;;  %v1064_v37 = vmax.f32 %v1062_v29, 0.0 }
 0x53c   : > { %1065 = vst [vmem:[#allocation2] sm:$0xff] %v1063_v34  ;;  %1066 = vst [vmem:[#allocation2 + $0x8] sm:$0xff] %v1064_v37  ;;  %v1072_v61 = vmul.f32 (!%p1224_p7), %v1071_v27, %v1063_v34  ;;  %v1073_v62 = vmul.f32 (!%p1224_p7), %v1071_v27, %v1064_v37 }
 0x53e   : > { %v1074_v20 = vrot.slane %v1072_v61, 4  ;;  %v1080_v5 = vrot.slane %v1073_v62, 4 }
 0x540   : > { %v1075_v0 = vadd.f32 %v1074_v20, %v1072_v61  ;;  %v1081_v1 = vadd.f32 %v1080_v5, %v1073_v62 }
 0x542   : > { %v1076_v35 = vrot.slane %v1075_v0, 2  ;;  %v1082_v3 = vrot.slane %v1081_v1, 2 }
 0x544   : > { %v1077_v36 = vadd.f32 %v1076_v35, %v1075_v0  ;;  %v1083_v4 = vadd.f32 %v1082_v3, %v1081_v1 }
 0x546   : > { %v1078_v6 = vrot.slane %v1077_v36, 1  ;;  %v1084_v7 = vrot.slane %v1083_v4, 1 }
 0x548   : > { %v1079_v8 = vadd.f32 %v1078_v6, %v1077_v36  ;;  %v1085_v9 = vadd.f32 %v1084_v7, %v1083_v4 }
 0x54a   : > { %v1089_v11 = vsel %vm1088_vm7, %v1085_v9, %v1079_v8 }
 0x54b   : > { %v1092_v12 = vsel %vm1091_vm8, %v1089_v11, 0.0 }
 0x54c   : > { %1093 = vadd.xlane.f32.xlu0 %v1092_v12 }
 0x5d9   : > { %v1094_v14 = vpop.xlane.xlu0 %1093 }
 0x5da   : > { %v1102_v15 = vadd.f32 %v1225_v13, %v1094_v14 }
 0x5dc   : > { %1104 = vst.msk [vmem:[%s1879_s6] sm:$0x3] %vm1103_vm9, %v1102_v15 }
 0x5dd PF: > { %p18_p4 = scmp.ge.s32.totalorder %s1567_s27, 5   ;;  %s1883_s23 = smov %s1488_s24 }
 0x5de   : > { %s1884_s24 = smov %s1492_s25  ;;  %s1885_s25 = smov %s1577_s30 }
 0x5df   : > { %s1886_s26 = smov %s1567_s27  ;;  %20 = sbr.rel (!%p18_p4) target bundleno = 6 (0x6), region = 94 }
 0x5e6   :  { %1116 = vsyncpa [#allocation5], 1 }
 0x5e7   :  { %1118 = vsyncpa [#allocation5 + $0x1], 1 }

</bundles_post_ra>
